<compile_context>
chip_gen: v6e
topology: v6e:2x2x1
jax: 0.10.0
libtpu: 0.0.40
codegen_flags: <defaults>
</compile_context>

<pallas_src>
import functools

import jax
import jax.numpy as jnp
from jax.experimental import pallas as pl
from jax.experimental.pallas import tpu as pltpu

# ----------------------------- "config" --------------------------------------
BATCH = 2
NUM_TRACK = 8
NUM_DET = 8
NUM_HYPO = 2            # forward hard-codes 2 velocity hypotheses
TRAJ_LEN = 8            # hypothesis length = 1 current frame + 7 history frames
NUM_FUTURE = 8
HIDDEN = 32
IN_DIM = 6              # motion_input_dim: [x, y, heading, vx, vy, time]
OUT_DIM = NUM_FUTURE * 3
DIST_THRESH = 5.0
LANE = 128
HPAD = 128              # hidden dim zero-padded to a full 128-lane width
O_PAD = 32              # output lanes (24 real); narrow rows -> small writes


def _round_up(a, b):
    return ((a + b - 1) // b) * b


def _bf16_elementwise_ok():
    # v6e / v7x have a bf16 VPU; keep f32 elementwise on v5e and older.
    try:
        kind = jax.devices()[0].device_kind.lower()
    except Exception:
        return False
    return any(t in kind for t in ("v6", "v7", "7x"))


# ----------------------------- fused Pallas kernel ----------------------------
def fused_motion_kernel(x_ref, tmask_ref, gt_ref, base_ref, lmask_ref,
                        w1_ref, b1_ref, w2_ref, b2_ref, w3_ref, b3_ref,
                        pred_ref, loss_ref, *, elem_dtype):
    tm, L = tmask_ref.shape

    # ---- MotionEncoder MLP: bf16 MXU operands, f32 accumulation. -------------
    h = jnp.dot(x_ref[...], w1_ref[...], preferred_element_type=jnp.float32)
    h = jnp.maximum(h.astype(elem_dtype) + b1_ref[...], 0.0)
    h = jnp.dot(h.astype(jnp.bfloat16), w2_ref[...],
                preferred_element_type=jnp.float32)
    h = jnp.maximum(h.astype(elem_dtype) + b2_ref[...], 0.0)       # (TM*L, HPAD)

    # Masked temporal mean-pool; the (TM*L,H) -> (TM,L,H) split is sublane-
    # aligned (L == 8), so it is layout-preserving.
    h = h.reshape(tm, L, h.shape[-1])
    m = tmask_ref[...]                                              # (TM, L) f32
    pooled = jnp.sum((h * m.astype(elem_dtype)[..., None]).astype(jnp.float32),
                     axis=1)                                        # (TM, HPAD)
    denom = jnp.maximum(jnp.sum(m, axis=1, keepdims=True), 1.0)
    pooled = pooled * pl.reciprocal(denom, approx=True)             # EUP divide

    pred = jnp.dot(pooled.astype(jnp.bfloat16), w3_ref[...],
                   preferred_element_type=jnp.float32) + b3_ref[...]  # (TM, O_PAD) f32
    pred_ref[...] = pred.astype(pred_ref.dtype)                     # bf16, 32 lanes

    # ---- Fused masked WeightedSmoothL1 (beta = 1/9) on local future traj. ----
    beta = 1.0 / 9.0
    d = pred + base_ref[...] - gt_ref[...]
    ad = jnp.abs(d)
    l = jnp.where(ad < beta, 0.5 * d * d / beta, ad - 0.5 * beta)
    l = l * lmask_ref[...]
    # Per-step partials folded to one (8, O_PAD) tile with vector adds only;
    # the single scalar reduction + divide happen in JAX over (G, 8, O_PAD).
    l = l.reshape(tm // 8, 8, l.shape[-1])
    loss_ref[...] = jnp.sum(l, axis=0, keepdims=True)


def motion_pred_and_loss(hist_feat, time_valid, gt_rows, base_rows,
                         loss_mask_rows, enc_params):
    """Encoder + masked SmoothL1 partial sums in one pallas_call.

    hist_feat:      (M, L, IN_DIM) f32
    time_valid:     (M, L) f32
    gt_rows:        (M, OUT_DIM) f32   per-row GT future (frame-major x,y,heading)
    base_rows:      (M, OUT_DIM) f32   detached future_traj_init_local[..., [0,1,6]]
    loss_mask_rows: (M, OUT_DIM) f32   per-element loss mask
    Returns (pred (M, OUT_DIM) f32, loss_sum scalar f32).
    """
    M, L, D = hist_feat.shape
    w1, b1, w2, b2, w3, b3 = enc_params
    elem_dtype = jnp.bfloat16 if _bf16_elementwise_ok() else jnp.float32

    # Row tile: as large as practical (VMEM is not binding), but guarantee at
    # least 2 grid steps when 8-sublane alignment allows, so both v7x
    # TensorCores get work under dimension_semantics=("parallel",).
    TM = min(_round_up(M, 8), 1024)
    if _round_up(M, TM) // TM == 1 and TM % 16 == 0:
        TM //= 2
    M_pad = _round_up(M, TM)
    G = M_pad // TM

    def pad_rows(a, width):
        a = jnp.pad(a, ((0, M_pad - M), (0, width - a.shape[-1])))
        return a.astype(jnp.float32)

    # Wrapper-side layout plumbing (free): flatten rows, bf16 MXU operands,
    # zero-pad hidden dim to 128 lanes, zero-pad the 24 output lanes to 32.
    x2d = jnp.pad(hist_feat, ((0, M_pad - M), (0, 0), (0, 0))) \
             .reshape(M_pad * L, D).astype(jnp.bfloat16)
    tmask = pad_rows(time_valid, L)
    gt_p = pad_rows(gt_rows, O_PAD)
    base_p = pad_rows(base_rows, O_PAD)
    lmask_p = pad_rows(loss_mask_rows, O_PAD)

    w1p = jnp.pad(w1, ((0, 0), (0, HPAD - HIDDEN))).astype(jnp.bfloat16)
    b1p = jnp.pad(b1, ((0, 0), (0, HPAD - HIDDEN))).astype(elem_dtype)
    w2p = jnp.pad(w2, ((0, HPAD - HIDDEN), (0, HPAD - HIDDEN))).astype(jnp.bfloat16)
    b2p = jnp.pad(b2, ((0, 0), (0, HPAD - HIDDEN))).astype(elem_dtype)
    w3p = jnp.pad(w3, ((0, HPAD - HIDDEN), (0, O_PAD - OUT_DIM))).astype(jnp.bfloat16)
    b3p = jnp.pad(b3, ((0, 0), (0, O_PAD - OUT_DIM))).astype(jnp.float32)

    def row_spec(bs):
        return pl.BlockSpec(bs, lambda i: (i, 0))

    def const_spec(bs):
        return pl.BlockSpec(bs, lambda i: (0, 0))

    pred_out, loss_part = pl.pallas_call(
        functools.partial(fused_motion_kernel, elem_dtype=elem_dtype),
        out_shape=(jax.ShapeDtypeStruct((M_pad, O_PAD), jnp.bfloat16),
                   jax.ShapeDtypeStruct((G, 8, O_PAD), jnp.float32)),
        grid=(G,),
        in_specs=[
            row_spec((TM * L, D)),       # x2d
            row_spec((TM, L)),           # temporal validity mask
            row_spec((TM, O_PAD)),       # gt rows
            row_spec((TM, O_PAD)),       # base rows
            row_spec((TM, O_PAD)),       # loss mask rows
            const_spec((D, HPAD)),       # w1
            const_spec((1, HPAD)),       # b1
            const_spec((HPAD, HPAD)),    # w2
            const_spec((1, HPAD)),       # b2
            const_spec((HPAD, O_PAD)),   # w3
            const_spec((1, O_PAD)),      # b3
        ],
        out_specs=(row_spec((TM, O_PAD)),
                   pl.BlockSpec((1, 8, O_PAD), lambda i: (i, 0, 0))),
        compiler_params=pltpu.CompilerParams(
            dimension_semantics=("parallel",)),
    )(x2d, tmask, gt_p, base_p, lmask_p, w1p, b1p, w2p, b2p, w3p, b3p)

    pred = pred_out[:M, :OUT_DIM].astype(jnp.float32)
    return pred, jnp.sum(loss_part)


# ----------------------------- JAX glue ---------------------------------------
def rotate_xy(xy, angle):
    c = jnp.cos(angle)
    s = jnp.sin(angle)
    x = xy[..., 0]
    y = xy[..., 1]
    return jnp.stack([x * c - y * s, x * s + y * c], axis=-1)


def transform_trajs_to_local_coords(boxes, center_xy, center_heading,
                                    pred_vel_hypo=None, heading_index=6):
    ndim_c = center_xy.shape[-1]
    out = boxes.at[..., :ndim_c].add(-center_xy)
    out = out.at[..., :2].set(rotate_xy(out[..., :2], -center_heading))
    out = out.at[..., heading_index].add(-center_heading)
    vel_local = None
    if pred_vel_hypo is not None:
        vel_local = rotate_xy(pred_vel_hypo, -center_heading)
    return out, vel_local


def generate_trajectory_hypotheses(transfered_det, det_boxes3d, traj,
                                   num_hypo, dist_thresh):
    B, N = transfered_det.shape[0], transfered_det.shape[1]
    Nd = det_boxes3d.shape[1]
    dist = jnp.linalg.norm(
        transfered_det[:, :, None, :2] - det_boxes3d[:, None, :, :2], axis=-1)
    neg_min, matched_det_id = jax.lax.top_k(-dist, num_hypo - 1)
    valid = (-neg_min) < dist_thresh
    matched_id = jnp.where(valid, matched_det_id, Nd)
    det_with_bg = jnp.concatenate(
        [det_boxes3d, jnp.zeros((B, 1, 7), det_boxes3d.dtype)], axis=1)
    group = det_with_bg[jnp.arange(B)[:, None, None], matched_id]     # (B,N,nh-1,7)
    group = jnp.concatenate(
        [group, jnp.zeros(group.shape[:-1] + (1,), group.dtype)], -1)  # + time
    td = transfered_det[:, None, :, None, :]                           # (B,1,N,1,8)
    global_candidates = jnp.concatenate([td, group[:, None]], axis=3)  # (B,1,N,nh,8)
    traj_repeat = jnp.repeat(traj[:, :, :, None, :],
                             global_candidates.shape[3], axis=3)
    hypotheses = jnp.concatenate([global_candidates, traj_repeat], axis=1)
    return hypotheses, global_candidates, valid


def prepare_motion_inputs(traj_rois, pred_vel, det_vel):
    """Reproduces get_pred_traj() preprocessing: encoder features, temporal
    validity, and the detached local future-init base rows for the loss."""
    B, L, N, Hh, _ = traj_rois.shape
    history_traj = traj_rois
    future_traj_init = jnp.repeat(traj_rois[:, 0:1], NUM_FUTURE, axis=1)
    future_traj_center = jnp.repeat(traj_rois[:, 0:1, :, :, :3], NUM_FUTURE, axis=1)

    # NOTE: matches the reference module, which indexes det_vel by track
    # position (implicitly assumes num_det == num_track).
    pred_vel_hypos = 0.1 * jnp.broadcast_to(
        pred_vel[:, None, :, None, :], (B, L, N, 2, 2))
    pred_vel_hypos = pred_vel_hypos.at[:, :, :, 1].set(
        0.1 * jnp.broadcast_to(det_vel[:, None, :, :], (B, L, N, 2)))

    steps = 0.1 * (jnp.arange(NUM_FUTURE, dtype=jnp.float32) + 1.0)
    delta = steps[None, :, None, None, None] * pred_vel[:, None, :, None, :]
    future_traj_center = future_traj_center.at[..., :2].add(delta)
    future_traj_init = future_traj_init.at[..., :2].set(future_traj_center[..., :2])

    empty_mask = jnp.broadcast_to(
        traj_rois[:, 0:1, :, :, 3:6].sum(-1) == 0, (B, L, N, Hh))

    center_xy = history_traj[:, 0:1, :, :, 0:2]
    center_heading = history_traj[:, 0:1, :, :, 6]
    history_traj_local, history_vel_local = transform_trajs_to_local_coords(
        history_traj, center_xy, center_heading, pred_vel_hypos, heading_index=6)
    future_traj_init_local, _ = transform_trajs_to_local_coords(
        future_traj_init, center_xy, center_heading, None, heading_index=6)

    feat = jnp.concatenate(
        [history_traj_local[..., :2], history_traj_local[..., 6:7],
         history_vel_local, history_traj_local[..., 7:8]], -1)         # (B,L,N,Hh,6)
    feat = jnp.transpose(feat, (0, 2, 3, 1, 4)).reshape(B * N * Hh, L, IN_DIM)
    time_valid = (~jnp.transpose(empty_mask, (0, 2, 3, 1))).reshape(B * N * Hh, L)

    base = future_traj_init_local[..., jnp.array([0, 1, 6])]           # (B,F,N,Hh,3)
    base_rows = jnp.transpose(base, (0, 2, 3, 1, 4)).reshape(
        B * N * Hh, NUM_FUTURE * 3)
    return (feat.astype(jnp.float32), time_valid.astype(jnp.float32),
            base_rows.astype(jnp.float32))


# ----------------------------- main -------------------------------------------
if __name__ == "__main__":
    key = jax.random.PRNGKey(0)
    ks = jax.random.split(key, 11)

    # deterministic MotionEncoder parameters
    w1 = 0.1 * jax.random.normal(ks[0], (IN_DIM, HIDDEN), jnp.float32)
    b1 = jnp.zeros((1, HIDDEN), jnp.float32)
    w2 = 0.1 * jax.random.normal(ks[1], (HIDDEN, HIDDEN), jnp.float32)
    b2 = jnp.zeros((1, HIDDEN), jnp.float32)
    w3 = 0.1 * jax.random.normal(ks[2], (HIDDEN, OUT_DIM), jnp.float32)
    b3 = jnp.zeros((1, OUT_DIM), jnp.float32)
    enc_params = (w1, b1, w2, b2, w3, b3)

    # synthetic stand-ins for organize_proposals() outputs
    box_scale = jnp.array([10., 10., 1., 0., 0., 0., 1., 0.], jnp.float32)
    box_bias = jnp.array([0., 0., 0., 4., 2., 1.5, 0., 0.1], jnp.float32)
    pred_boxes3d = jax.random.normal(ks[3], (BATCH, NUM_TRACK, 8)) * box_scale + box_bias
    det_boxes3d = (jax.random.normal(ks[4], (BATCH, NUM_DET, 7)) * box_scale[:7]
                   + box_bias[:7])
    traj = (jax.random.normal(ks[5], (BATCH, TRAJ_LEN - 1, NUM_TRACK, 8)) * box_scale
            + box_bias)
    pred_vel = jax.random.normal(ks[6], (BATCH, NUM_TRACK, 2), jnp.float32)
    det_vel = jax.random.normal(ks[7], (BATCH, NUM_DET, 2), jnp.float32)

    hypotheses, global_candidates, _ = generate_trajectory_hypotheses(
        pred_boxes3d, det_boxes3d, traj, NUM_HYPO, DIST_THRESH)

    hist_feat, time_valid, base_rows = prepare_motion_inputs(
        hypotheses, pred_vel, det_vel)

    # synthetic stand-ins for get_targets() outputs (needs 3D-IoU association)
    gt_future_traj_local = jax.random.normal(
        ks[8], (BATCH, NUM_FUTURE, NUM_TRACK, 1, 3), jnp.float32)
    fg_reg_mask = jax.random.uniform(ks[9], (BATCH, 1, NUM_TRACK, NUM_HYPO)) > 0.3
    valid_gt_mask = jax.random.uniform(
        ks[10], (BATCH, NUM_FUTURE, NUM_TRACK, NUM_HYPO)) > 0.2
    valid_mask = jnp.logical_and(
        valid_gt_mask, jnp.broadcast_to(fg_reg_mask, valid_gt_mask.shape))

    # Row-major (B, N, Hh, F*3) layouts for the fused kernel (wrapper plumbing).
    M = BATCH * NUM_TRACK * NUM_HYPO
    gt = jnp.broadcast_to(gt_future_traj_local,
                          (BATCH, NUM_FUTURE, NUM_TRACK, NUM_HYPO, 3))
    gt_rows = jnp.transpose(gt, (0, 2, 3, 1, 4)).reshape(M, OUT_DIM)
    vm_rows = jnp.transpose(valid_mask, (0, 2, 3, 1)).reshape(M, NUM_FUTURE)
    loss_mask_rows = jnp.repeat(vm_rows.astype(jnp.float32), 3, axis=-1)

    pred, loss_sum = motion_pred_and_loss(
        hist_feat, time_valid, gt_rows, base_rows, loss_mask_rows, enc_params)

    # Reference semantics: loss[valid_mask].sum() / valid_mask.sum()
    # (denominator counts valid boxes once — not x3 coordinates).
    count = jnp.sum(valid_mask.astype(jnp.float32))
    loss = loss_sum / jnp.maximum(count, 1.0)
    loss = jax.block_until_ready(loss)
    print("KERNEL_OK")
</pallas_src>

<mosaic_0001>
module attributes {stable_mosaic.version = 11 : i64} {
  func.func @fused_motion_kernel(%arg0: i32, %arg1: memref<128x6xbf16, #tpu.memory_space<vmem>>, %arg2: memref<16x8xf32, #tpu.memory_space<vmem>>, %arg3: memref<16x32xf32, #tpu.memory_space<vmem>>, %arg4: memref<16x32xf32, #tpu.memory_space<vmem>>, %arg5: memref<16x32xf32, #tpu.memory_space<vmem>>, %arg6: memref<6x128xbf16, #tpu.memory_space<vmem>>, %arg7: memref<1x128xf32, #tpu.memory_space<vmem>>, %arg8: memref<128x128xbf16, #tpu.memory_space<vmem>>, %arg9: memref<1x128xf32, #tpu.memory_space<vmem>>, %arg10: memref<128x32xbf16, #tpu.memory_space<vmem>>, %arg11: memref<1x32xf32, #tpu.memory_space<vmem>>, %arg12: memref<16x32xbf16, #tpu.memory_space<vmem>>, %arg13: memref<1x8x32xf32, #tpu.memory_space<vmem>>) attributes {dimension_semantics = [#tpu.dimension_semantics<parallel>], iteration_bounds = array<i64: 2>, scalar_prefetch = 0 : i64, scratch_operands = 0 : i64, tpu.core_type = #tpu.core_type<tc>, window_params = [{transform_indices = @transform_0, window_bounds = array<i64: 128, 6>}, {transform_indices = @transform_1, window_bounds = array<i64: 16, 8>}, {transform_indices = @transform_2, window_bounds = array<i64: 16, 32>}, {transform_indices = @transform_3, window_bounds = array<i64: 16, 32>}, {transform_indices = @transform_4, window_bounds = array<i64: 16, 32>}, {pipeline_mode = #tpu.pipeline_mode<synchronous>, transform_indices = @transform_5, window_bounds = array<i64: 6, 128>}, {pipeline_mode = #tpu.pipeline_mode<synchronous>, transform_indices = @transform_6, window_bounds = array<i64: 1, 128>}, {pipeline_mode = #tpu.pipeline_mode<synchronous>, transform_indices = @transform_7, window_bounds = array<i64: 128, 128>}, {pipeline_mode = #tpu.pipeline_mode<synchronous>, transform_indices = @transform_8, window_bounds = array<i64: 1, 128>}, {pipeline_mode = #tpu.pipeline_mode<synchronous>, transform_indices = @transform_9, window_bounds = array<i64: 128, 32>}, {pipeline_mode = #tpu.pipeline_mode<synchronous>, transform_indices = @transform_10, window_bounds = array<i64: 1, 32>}, {transform_indices = @transform_11, window_bounds = array<i64: 16, 32>}, {transform_indices = @transform_12, window_bounds = array<i64: 1, 8, 32>}]} {
    %c0 = arith.constant 0 : index
    %c0_0 = arith.constant 0 : index
    %0 = vector.load %arg1[%c0, %c0_0] : memref<128x6xbf16, #tpu.memory_space<vmem>>, vector<128x6xbf16>
    %c0_1 = arith.constant 0 : index
    %c0_2 = arith.constant 0 : index
    %1 = vector.load %arg6[%c0_1, %c0_2] : memref<6x128xbf16, #tpu.memory_space<vmem>>, vector<6x128xbf16>
    %cst = arith.constant dense<0.000000e+00> : vector<128x128xf32>
    %2 = tpu.matmul %0, %1, %cst {dimension_numbers = #tpu.dot_dimension_numbers<[1], [0], [0], [1], [0, 0, 1, 1], [], []>} : vector<128x6xbf16>, vector<6x128xbf16>, vector<128x128xf32> -> vector<128x128xf32>
    %c0_3 = arith.constant 0 : index
    %c0_4 = arith.constant 0 : index
    %3 = vector.load %arg7[%c0_3, %c0_4] : memref<1x128xf32, #tpu.memory_space<vmem>>, vector<1x128xf32>
    %4 = vector.broadcast %3 : vector<1x128xf32> to vector<128x128xf32>
    %5 = arith.addf %2, %4 : vector<128x128xf32>
    %cst_5 = arith.constant 0.000000e+00 : f32
    %6 = vector.broadcast %cst_5 : f32 to vector<128x128xf32>
    %7 = arith.maximumf %5, %6 : vector<128x128xf32>
    %8 = arith.truncf %7 : vector<128x128xf32> to vector<128x128xbf16>
    %c0_6 = arith.constant 0 : index
    %c0_7 = arith.constant 0 : index
    %9 = vector.load %arg8[%c0_6, %c0_7] : memref<128x128xbf16, #tpu.memory_space<vmem>>, vector<128x128xbf16>
    %cst_8 = arith.constant dense<0.000000e+00> : vector<128x128xf32>
    %10 = tpu.matmul %8, %9, %cst_8 {dimension_numbers = #tpu.dot_dimension_numbers<[1], [0], [0], [1], [0, 0, 1, 1], [], []>} : vector<128x128xbf16>, vector<128x128xbf16>, vector<128x128xf32> -> vector<128x128xf32>
    %c0_9 = arith.constant 0 : index
    %c0_10 = arith.constant 0 : index
    %11 = vector.load %arg9[%c0_9, %c0_10] : memref<1x128xf32, #tpu.memory_space<vmem>>, vector<1x128xf32>
    %12 = vector.broadcast %11 : vector<1x128xf32> to vector<128x128xf32>
    %13 = arith.addf %10, %12 : vector<128x128xf32>
    %cst_11 = arith.constant 0.000000e+00 : f32
    %14 = vector.broadcast %cst_11 : f32 to vector<128x128xf32>
    %15 = arith.maximumf %13, %14 : vector<128x128xf32>
    %16 = vector.shape_cast %15 : vector<128x128xf32> to vector<16x8x128xf32>
    %c0_12 = arith.constant 0 : index
    %c0_13 = arith.constant 0 : index
    %17 = vector.load %arg2[%c0_12, %c0_13] : memref<16x8xf32, #tpu.memory_space<vmem>>, vector<16x8xf32>
    %18 = vector.shape_cast %17 : vector<16x8xf32> to vector<16x8x1xf32>
    %19 = vector.broadcast %18 : vector<16x8x1xf32> to vector<16x8x128xf32>
    %20 = arith.mulf %16, %19 : vector<16x8x128xf32>
    %cst_14 = arith.constant dense<0.000000e+00> : vector<16x128xf32>
    %21 = vector.multi_reduction <add>, %20, %cst_14 [1] : vector<16x8x128xf32> to vector<16x128xf32>
    %cst_15 = arith.constant dense<0.000000e+00> : vector<16xf32>
    %22 = vector.multi_reduction <add>, %17, %cst_15 [1] : vector<16x8xf32> to vector<16xf32>
    %23 = vector.shape_cast %22 : vector<16xf32> to vector<16x1xf32>
    %cst_16 = arith.constant 1.000000e+00 : f32
    %24 = vector.broadcast %cst_16 : f32 to vector<16x1xf32>
    %25 = arith.maximumf %23, %24 : vector<16x1xf32>
    %26 = tpu.reciprocal %25 {approx = true} : vector<16x1xf32> -> vector<16x1xf32>
    %27 = vector.broadcast %26 : vector<16x1xf32> to vector<16x128xf32>
    %28 = arith.mulf %21, %27 : vector<16x128xf32>
    %29 = arith.truncf %28 : vector<16x128xf32> to vector<16x128xbf16>
    %c0_17 = arith.constant 0 : index
    %c0_18 = arith.constant 0 : index
    %30 = vector.load %arg10[%c0_17, %c0_18] : memref<128x32xbf16, #tpu.memory_space<vmem>>, vector<128x32xbf16>
    %cst_19 = arith.constant dense<0.000000e+00> : vector<16x32xf32>
    %31 = tpu.matmul %29, %30, %cst_19 {dimension_numbers = #tpu.dot_dimension_numbers<[1], [0], [0], [1], [0, 0, 1, 1], [], []>} : vector<16x128xbf16>, vector<128x32xbf16>, vector<16x32xf32> -> vector<16x32xf32>
    %c0_20 = arith.constant 0 : index
    %c0_21 = arith.constant 0 : index
    %32 = vector.load %arg11[%c0_20, %c0_21] : memref<1x32xf32, #tpu.memory_space<vmem>>, vector<1x32xf32>
    %33 = vector.broadcast %32 : vector<1x32xf32> to vector<16x32xf32>
    %34 = arith.addf %31, %33 : vector<16x32xf32>
    %35 = arith.truncf %34 : vector<16x32xf32> to vector<16x32xbf16>
    %c0_22 = arith.constant 0 : index
    %c0_23 = arith.constant 0 : index
    %36 = vector.load %arg12[%c0_22, %c0_23] : memref<16x32xbf16, #tpu.memory_space<vmem>>, vector<16x32xbf16>
    tpu.vector_store %arg12[%c0_22, %c0_23], %35 {strides = array<i32>} : memref<16x32xbf16, #tpu.memory_space<vmem>>, vector<16x32xbf16>,
    %c0_24 = arith.constant 0 : index
    %c0_25 = arith.constant 0 : index
    %37 = vector.load %arg4[%c0_24, %c0_25] : memref<16x32xf32, #tpu.memory_space<vmem>>, vector<16x32xf32>
    %38 = arith.addf %34, %37 : vector<16x32xf32>
    %c0_26 = arith.constant 0 : index
    %c0_27 = arith.constant 0 : index
    %39 = vector.load %arg3[%c0_26, %c0_27] : memref<16x32xf32, #tpu.memory_space<vmem>>, vector<16x32xf32>
    %40 = arith.subf %38, %39 : vector<16x32xf32>
    %41 = math.absf %40 : vector<16x32xf32>
    %cst_28 = arith.constant 0.111111112 : f32
    %42 = vector.broadcast %cst_28 : f32 to vector<16x32xf32>
    %43 = arith.cmpf olt, %41, %42 : vector<16x32xf32>
    %cst_29 = arith.constant 5.000000e-01 : f32
    %44 = vector.broadcast %cst_29 : f32 to vector<16x32xf32>
    %45 = arith.mulf %44, %40 : vector<16x32xf32>
    %46 = arith.mulf %45, %40 : vector<16x32xf32>
    %cst_30 = arith.constant 0.111111112 : f32
    %47 = vector.broadcast %cst_30 : f32 to vector<16x32xf32>
    %48 = arith.divf %46, %47 : vector<16x32xf32>
    %cst_31 = arith.constant 0.055555556 : f32
    %49 = vector.broadcast %cst_31 : f32 to vector<16x32xf32>
    %50 = arith.subf %41, %49 : vector<16x32xf32>
    %51 = arith.select %43, %48, %50 : vector<16x32xi1>, vector<16x32xf32>
    %c0_32 = arith.constant 0 : index
    %c0_33 = arith.constant 0 : index
    %52 = vector.load %arg5[%c0_32, %c0_33] : memref<16x32xf32, #tpu.memory_space<vmem>>, vector<16x32xf32>
    %53 = arith.mulf %51, %52 : vector<16x32xf32>
    %54 = vector.shape_cast %53 : vector<16x32xf32> to vector<2x8x32xf32>
    %cst_34 = arith.constant dense<0.000000e+00> : vector<8x32xf32>
    %55 = vector.multi_reduction <add>, %54, %cst_34 [0] : vector<2x8x32xf32> to vector<8x32xf32>
    %56 = vector.shape_cast %55 : vector<8x32xf32> to vector<1x8x32xf32>
    %c0_35 = arith.constant 0 : index
    %c0_36 = arith.constant 0 : index
    %c0_37 = arith.constant 0 : index
    %57 = vector.load %arg13[%c0_35, %c0_36, %c0_37] : memref<1x8x32xf32, #tpu.memory_space<vmem>>, vector<1x8x32xf32>
    tpu.vector_store %arg13[%c0_35, %c0_36, %c0_37], %56 {strides = array<i32>} : memref<1x8x32xf32, #tpu.memory_space<vmem>>, vector<1x8x32xf32>,
    return
  }
  func.func @transform_0(%arg0: i32) -> (i32, i32) {
    %c0_i32 = arith.constant 0 : i32
    %c0_i32_0 = arith.constant 0 : i32
    return %arg0, %c0_i32 : i32, i32
  }
  func.func @transform_1(%arg0: i32) -> (i32, i32) {
    %c0_i32 = arith.constant 0 : i32
    %c0_i32_0 = arith.constant 0 : i32
    return %arg0, %c0_i32 : i32, i32
  }
  func.func @transform_2(%arg0: i32) -> (i32, i32) {
    %c0_i32 = arith.constant 0 : i32
    %c0_i32_0 = arith.constant 0 : i32
    return %arg0, %c0_i32 : i32, i32
  }
  func.func @transform_3(%arg0: i32) -> (i32, i32) {
    %c0_i32 = arith.constant 0 : i32
    %c0_i32_0 = arith.constant 0 : i32
    return %arg0, %c0_i32 : i32, i32
  }
  func.func @transform_4(%arg0: i32) -> (i32, i32) {
    %c0_i32 = arith.constant 0 : i32
    %c0_i32_0 = arith.constant 0 : i32
    return %arg0, %c0_i32 : i32, i32
  }
  func.func @transform_5(%arg0: i32) -> (i32, i32) {
    %c0_i32 = arith.constant 0 : i32
    %c0_i32_0 = arith.constant 0 : i32
    %c0_i32_1 = arith.constant 0 : i32
    return %c0_i32, %c0_i32_0 : i32, i32
  }
  func.func @transform_6(%arg0: i32) -> (i32, i32) {
    %c0_i32 = arith.constant 0 : i32
    %c0_i32_0 = arith.constant 0 : i32
    %c0_i32_1 = arith.constant 0 : i32
    return %c0_i32, %c0_i32_0 : i32, i32
  }
  func.func @transform_7(%arg0: i32) -> (i32, i32) {
    %c0_i32 = arith.constant 0 : i32
    %c0_i32_0 = arith.constant 0 : i32
    %c0_i32_1 = arith.constant 0 : i32
    return %c0_i32, %c0_i32_0 : i32, i32
  }
  func.func @transform_8(%arg0: i32) -> (i32, i32) {
    %c0_i32 = arith.constant 0 : i32
    %c0_i32_0 = arith.constant 0 : i32
    %c0_i32_1 = arith.constant 0 : i32
    return %c0_i32, %c0_i32_0 : i32, i32
  }
  func.func @transform_9(%arg0: i32) -> (i32, i32) {
    %c0_i32 = arith.constant 0 : i32
    %c0_i32_0 = arith.constant 0 : i32
    %c0_i32_1 = arith.constant 0 : i32
    return %c0_i32, %c0_i32_0 : i32, i32
  }
  func.func @transform_10(%arg0: i32) -> (i32, i32) {
    %c0_i32 = arith.constant 0 : i32
    %c0_i32_0 = arith.constant 0 : i32
    %c0_i32_1 = arith.constant 0 : i32
    return %c0_i32, %c0_i32_0 : i32, i32
  }
  func.func @transform_11(%arg0: i32) -> (i32, i32) {
    %c0_i32 = arith.constant 0 : i32
    %c0_i32_0 = arith.constant 0 : i32
    return %arg0, %c0_i32 : i32, i32
  }
  func.func @transform_12(%arg0: i32) -> (i32, i32, i32) {
    %c0_i32 = arith.constant 0 : i32
    %c0_i32_0 = arith.constant 0 : i32
    %c0_i32_1 = arith.constant 0 : i32
    return %arg0, %c0_i32, %c0_i32_0 : i32, i32, i32
  }
}

</mosaic_0001>

<bundles_post_ra>
// kernel: tpu_custom_call.1
= control target key start
LH: loop header
LB: loop body
LE: loop exit
PB: predicated region body
PF: predicated region fallthrough
CT: control target
= control target key end

     0   :  { %s2347_s0 = inlined_call_operand.vmem [shape: bf16[256,6], index: 0, kind: input, shape index: {}]   ;;  %s2348_s1 = inlined_call_operand.vmem [shape: f32[32,8], index: 1, kind: input, shape index: {}]   ;;  %s2349_s2 = inlined_call_operand.vmem [shape: f32[32,32], index: 2, kind: input, shape index: {}]   ;;  %s2350_s3 = inlined_call_operand.vmem [shape: f32[32,32], index: 3, kind: input, shape index: {}]   ;;  %s2351_s4 = inlined_call_operand.vmem [shape: f32[32,32], index: 4, kind: input, shape index: {}]   ;;  %s2352_s5 = inlined_call_operand.vmem [shape: bf16[6,128], index: 5, kind: input, shape index: {}]   ;;  %s2353_s6 = inlined_call_operand.vmem [shape: f32[1,128], index: 6, kind: input, shape index: {}]   ;;  %s2354_s7 = inlined_call_operand.vmem [shape: bf16[128,128], index: 7, kind: input, shape index: {}]   ;;  %s2355_s8 = inlined_call_operand.vmem [shape: f32[1,128], index: 8, kind: input, shape index: {}]   ;;  %s2356_s9 = inlined_call_operand.vmem [shape: bf16[128,32], index: 9, kind: input, shape index: {}]   ;;  %s2357_s10 = inlined_call_operand.vmem [shape: f32[1,32], index: 10, kind: input, shape index: {}]   ;;  %s2358_s11 = inlined_call_operand.hbm [shape: bf16[32,32], index: 11, kind: output, shape index: {0}]   ;;  %s2359_s12 = inlined_call_operand.hbm [shape: f32[2,8,32], index: 12, kind: output, shape index: {1}]  }
   0x1   :  { %2362 = sst [smem:[#allocation9_spill]] %s2347_s0 }
   0x2   :  { %2363 = sst [smem:[#allocation10_spill]] %s2348_s1 }
   0x3   :  { %2364 = sst [smem:[#allocation11_spill]] %s2352_s5 }
   0x4   :  { %18 = vsyncpa [#allocation3], 0 }
   0x5   :  { %20 = vsyncpa [#allocation3 + $0x1], 0 }
   0x6   :  { %21 = vsyncpa [#allocation5], 0 }
   0x7   :  { %23 = vsyncpa [#allocation5 + $0x1], 0  ;;  %s2021_s21 = smov 0   ;;  %s2023_s22 = smov 0  }
   0x8   :  { %s2025_s23 = smov 0   ;;  %s2027_s24 = smov 0  }
   0x9 LB: > { %s2042_s25 = sadd.s32 4294967295, %s1948_s24   ;;  %s1612_s26 = sadd.s32 4294967294, %s1948_s24   ;;  %s1948_s24 = sphi %s2027_s24, %s2378_s24   ;;  %s1944_s23 = sphi %s2025_s23, %s2377_s23   ;;  %s1940_s22 = sphi %s2023_s22, %s2376_s22   ;;  %s1936_s21 = sphi %s2021_s21, %s2375_s21  }
   0xa   : > { %s2046_s27 = sadd.s32 1, %s1948_s24   ;;  %s292_s28 = sadd.s32 1, %s1944_s23 }
   0xb   : > { %s289_s29 = ssub.s32 %s1948_s24, %s2046_s27  ;;  %p302_p0 = scmp.ne.s32.totalorder %s1944_s23, %s1940_s22 }
   0xc   : > { %p290_p1 = scmp.eq.s32.totalorder %s289_s29, 0  ;;  %p303_p2 = scmp.eq.s32.totalorder %s2042_s25, 1 }
   0xd   : > { %p308_p3 = scmp.ne.s32.totalorder %s1940_s22, %s1936_s21  ;;  %p309_p4 = scmp.eq.s32.totalorder %s1612_s26, 1 }
   0xe   : > { %s2057_s30 = scalar_select %p290_p1, %s1944_s23, %s292_s28  }
   0xf   : > { %p2059_p5 = por %p303_p2, %p302_p0  ;;  %p2063_p6 = por %p309_p4, %p308_p3 }
  0x10   : > { %2365 = sst [smem:[#allocation8_spill]] %s2057_s30  ;;  %p1615_p7 = scmp.ge.s32.totalorder %s1948_s24, 1 }
  0x11   : > { %p416_p8 = scmp.lt.s32.totalorder %s1948_s24, 3 }
  0x13   : > { %p417_p9 = pnand %p1615_p7, %p416_p8 }
  0x14   : > { %s2368_s5 = sld [smem:[#allocation11_spill]] (!%p417_p9)  ;;  %s1618_s17 = sshll.u32 (!%p417_p9), %s2042_s25, 4 }
  0x15   : > { %420 = sbr.rel (%p417_p9) target bundleno = 741 (0x2e5), region = 64  ;;  %p484_p10 = scmp.lt.s32.totalorder (!%p417_p9), %s1618_s17, 31 }
  0x16   : > { %s2369_s0 = sld [smem:[#allocation9_spill]] (!%p417_p9)  ;;  %s1620_s16 = sshll.u32 (!%p417_p9), %s2042_s25, 1 }
  0x17   : > { %p490_p11 = scmp.lt.s32.totalorder (!%p417_p9), %s1620_s16, 3  ;;  %s2370_s1 = sld [smem:[#allocation10_spill]] (!%p417_p9) }
  0x1a   : > { %v531_v0 = vld [vmem:[%s2368_s5] sm:$0x7]  ;;  %vm604_vm0 = vcmask 1042432   ;;  %v1838_v1 = vld [vmem:[%s2354_s7 + $0x38] sm:$0xff]   ;;  %v1839_v3 = vld [vmem:[%s2354_s7 + $0x30] sm:$0xff]   ;;  %s2380_s17 = smov (!%p484_p10, %s1618_s17), 31  ;;  %v915_v18 = vlaneseq }
  0x1b   : > { %1781 = vmatprep.subr.msk.bf16.mxu0 %vm604_vm0, %v531_v0  ;;  %v606_v2 = vsel %vm604_vm0, %v531_v0, 0  ;;  %1729 = vmatprep.subr.bf16.mxu1 %v1838_v1  ;;  %v1840_v4 = vld [vmem:[%s2354_s7 + $0x28] sm:$0xff]   ;;  %s1619_s15 = sshll.u32 %s2380_s17, 2  ;;  %vm579_vm1 = vcmask 48128   ;;  %v1841_v5 = vld [vmem:[%s2354_s7 + $0x20] sm:$0xff]   ;;  %v1842_v9 = vld [vmem:[%s2354_s7 + $0x18] sm:$0xff]  }
  0x1c   : > { %1712 = vmatpush3.bf16.msra.mxu0 %v606_v2  ;;  %1730 = vmatpush3.bf16.msra.mxu1 %v1838_v1  ;;  %s487_s19 = scalar_lea.vmem %s2369_s0, %s1619_s15  ;;  %v1843_v15 = vld [vmem:[%s2354_s7 + $0x10] sm:$0xff]   ;;  %v1844_v16 = vld [vmem:[%s2354_s7 + $0x8] sm:$0xff]   ;;  %v1845_v17 = vld [vmem:[%s2354_s7] sm:$0xff]   ;;  %v916_v19 = vshrl.u32 %v915_v18, 7  ;;  %s2382_s16 = smov (!%p490_p11, %s1620_s16), 3  ;;  %vm1139_vm2 = vcmask 64512  }
  0x1d   : > { %1731 = vmatprep.subr.bf16.mxu1 %v1839_v3  ;;  %v1830_v6 = vld [vmem:[%s487_s19] sm:$0xff]   ;;  %v1831_v7 = vld [vmem:[%s487_s19 + $0x8] sm:$0xff]   ;;  %v1832_v8 = vld [vmem:[%s487_s19 + $0x10] sm:$0xff]   ;;  %s2109_s18 = sshll.u32 %s2382_s16, 3  ;;  %vm1951_vm3 = vmmov 0   ;;  %vm1270_vm4 = vcmask 1041409  }
  0x1e   : > { %1713 = vmatprep.mubr.msk.bf16.mxu0 %vm579_vm1, %v1830_v6  ;;  %v1833_v10 = vld [vmem:[%s487_s19 + $0x18] sm:$0xff]   ;;  %v1834_v11 = vld [vmem:[%s487_s19 + $0x20] sm:$0xff]   ;;  %v1835_v12 = vld [vmem:[%s487_s19 + $0x28] sm:$0xff]   ;;  %v924_v20 = vsub.s32 1, %v916_v19  ;;  %s493_s20 = scalar_lea.vmem %s2370_s1, %s2109_s18  ;;  %v931_v27 = vsub.s32 2, %v916_v19  ;;  %v917_v29 = vsub.s32 0, %v916_v19  ;;  %s505_s28 = scalar_lea.vmem %s2350_s3, %s2109_s18 }
  0x1f   : > { %1714 = vmatmul.mubr.msk.bf16.vlgmr.msra.gmra.mxu0 %vm579_vm1, %v1831_v7  ;;  %v1836_v13 = vld [vmem:[%s487_s19 + $0x30] sm:$0xff]   ;;  %v1837_v14 = vld [vmem:[%s487_s19 + $0x38] sm:$0xff]   ;;  %v913_v21 = vld [vmem:[%s493_s20] sm:$0xff]  ;;  %v938_v31 = vsub.s32 3, %v916_v19  ;;  %v945_v35 = vsub.s32 4, %v916_v19  ;;  %v952_v38 = vsub.s32 5, %v916_v19 }
  0x20   : > { %1732 = vmatpush3.bf16.msra.mxu1 %v1839_v3  ;;  %1717 = vmatprep.mubr.msk.bf16.mxu0 %vm579_vm1, %v1832_v8  ;;  %v914_v22 = vld [vmem:[%s493_s20 + $0x8] sm:$0xff]  ;;  %v1140_v23 = vsel %vm1139_vm2, %v913_v21, 0.0  ;;  %v925_v24 = vrot.slane %v913_v21, %v924_v20  ;;  %v918_v30 = vrot.slane %v913_v21, %v917_v29  ;;  %v932_v36 = vrot.slane %v913_v21, %v931_v27  ;;  %v1628_v50 = vld [vmem:[%s2353_s6] ss:$0 sm:$0xff]  ;;  %s2251_s5 = sand.u32 1, %s1940_s22   ;;  %s499_s20 = scalar_lea.vmem %s2349_s2, %s2109_s18 }
  0x21   : > { %1733 = vmatprep.subr.bf16.mxu1 %v1840_v4  ;;  %1141 = vadd.xlane.f32.xlu0 %v1140_v23  ;;  %v1143_v25 = vsel %vm1139_vm2, %v914_v22, 0.0  ;;  %v981_v26 = vrot.slane %v914_v22, %v924_v20  ;;  %v988_v28 = vrot.slane %v914_v22, %v931_v27  ;;  %v939_v32 = vrot.slane %v913_v21, %v938_v31  ;;  %s2361_s16 = sshll.u32 %s2251_s5, 3  ;;  %s2360_s0 = sshll.u32 %s2042_s25, 7 }
  0x22   : > { %927 = vbcast.lane.b32.xlu1 %v925_v24, 256  ;;  %v974_v33 = vrot.slane %v914_v22, %v917_v29  ;;  %v995_v34 = vrot.slane %v914_v22, %v938_v31  ;;  %v946_v37 = vrot.slane %v913_v21, %v945_v35  ;;  %v1002_v39 = vrot.slane %v914_v22, %v945_v35  ;;  %s475_s30 = scalar_lea.vmem [#allocation2], %s2361_s16  ;;  %s2274_s19 = scalar_lea.hbm %s2358_s11, %s2360_s0 }
  0x23   : > { %v953_v40 = vrot.slane %v913_v21, %v952_v38  ;;  %v959_v41 = vsub.s32 6, %v916_v19  ;;  %v1009_v42 = vrot.slane %v914_v22, %v952_v38  ;;  %v966_v44 = vsub.s32 7, %v916_v19  ;;  %s1457_s26 = sshll.u32 %s475_s30, 4  ;;  %s1952_s0 = smov [#allocation2]   ;;  %s2276_s26 = int_to_ptr.vmem [resolvable:$true] %s1457_s26 }
  0x24   : > { %1734 = vmatpush3.bf16.msra.mxu1 %v1840_v4  ;;  %vm1273_vm5 = vcmask 1042434   ;;  %vm1276_vm6 = vcmask 1043459   ;;  %vm1279_vm7 = vcmask 1044484   ;;  %vm1282_vm8 = vcmask 1045509   ;;  %s1858_s15 = scalar_lea.vmem %s2276_s26, 128  ;;  %s1862_s16 = sshll.u32 %s1952_s0, 4  ;;  %s1863_s16 = int_to_ptr.vmem [resolvable:$false] %s1862_s16 }
  0x25   : > { %1735 = vmatprep.subr.bf16.mxu1 %v1841_v5  ;;  %1144 = vadd.xlane.f32.xlu0 %v1143_v25  ;;  %v960_v43 = vrot.slane %v913_v21, %v959_v41  ;;  %v1016_v45 = vrot.slane %v914_v22, %v959_v41  ;;  %v967_v46 = vrot.slane %v913_v21, %v966_v44  ;;  %v1846_v41 = vld [vmem:[%s2356_s9 + $0x38] sm:$0xff]   ;;  %vm1285_vm9 = vcmask 1046534   ;;  %p1859_p12 = scmp.ne.s32.totalorder %s2276_s26, %s1858_s15  ;;  %s1864_s1 = scalar_lea.vmem %s1863_s16, 256 }
  0x26   : > { %983 = vbcast.lane.b32.xlu1 %v981_v26, 256  ;;  %v1023_v47 = vrot.slane %v914_v22, %v966_v44  ;;  %v1848_v44 = vld [vmem:[%s2356_s9 + $0x28] sm:$0xff]   ;;  %vm1288_vm10 = vcmask 1047559   ;;  %vm1403_vm11 = vcmask 257024   ;;  %p1865_p1 = scmp.lt.s32.totalorder %s2276_s26, %s1863_s16  ;;  %p1866_p2 = scmp.lt.s32.totalorder %s1864_s1, %s1858_s15 }
  0x27   : > { %1718 = vmatmul.mubr.msk.bf16.gmra.mxu0 %vm579_vm1, %v1833_v10  ;;  %p1860_p13 = pnand %p1859_p12, %p2059_p5 }
  0x28   : > { %1736 = vmatpush3.bf16.msra.mxu1 %v1841_v5  ;;  %1721 = vmatprep.mubr.msk.bf16.mxu0 %vm579_vm1, %v1834_v11  ;;  %p1867_p3 = por %p1866_p2, %p1865_p1 }
  0x29   : > { %1737 = vmatprep.subr.bf16.mxu1 %v1842_v9  ;;  %p1861_p0 = pneg %p1860_p13 }
  0x2a   : > { %990 = vbcast.lane.b32.xlu1 %v988_v28, 256 }
  0x2b   : > { %p1868_p4 = pnand %p1867_p3, %p1861_p0 }
  0x2c   : > { %1738 = vmatpush3.bf16.msra.mxu1 %v1842_v9 }
  0x2d   : > { %1739 = vmatprep.subr.bf16.mxu1 %v1843_v15 }
  0x2e   : > { %920 = vbcast.lane.b32.xlu1 %v918_v30, 256 }
  0x2f   : > { %1722 = vmatmul.mubr.msk.bf16.gmra.mxu0 %vm579_vm1, %v1835_v12 }
  0x30   : > { %1725 = vmatprep.mubr.msk.bf16.mxu0 %vm579_vm1, %v1836_v13  ;;  %1740 = vmatpush3.bf16.msra.mxu1 %v1843_v15 }
  0x31   : > { %1741 = vmatprep.subr.bf16.mxu1 %v1844_v16 }
  0x32   : > { %941 = vbcast.lane.b32.xlu1 %v939_v32, 256 }
  0x34   : > { %1742 = vmatpush3.bf16.msra.mxu1 %v1844_v16 }
  0x35   : > { %1743 = vmatprep.subr.bf16.mxu1 %v1845_v17 }
  0x36   : > { %976 = vbcast.lane.b32.xlu1 %v974_v33, 256 }
  0x37   : > { %1726 = vmatmul.mubr.msk.bf16.gmra.mxu0 %vm579_vm1, %v1837_v14 }
  0x38   : > { %1744 = vmatpush3.bf16.msra.mxu1 %v1845_v17 }
  0x3a   : > { %997 = vbcast.lane.b32.xlu1 %v995_v34, 256 }
  0x3b   : > { %934 = vbcast.lane.b32.xlu0 %v932_v36, 256 }
  0x3e   : > { %948 = vbcast.lane.b32.xlu1 %v946_v37, 256 }
  0x3f   : > { %1004 = vbcast.lane.b32.xlu0 %v1002_v39, 256 }
  0x42   : > { %955 = vbcast.lane.b32.xlu1 %v953_v40, 256 }
  0x43   : > { %1011 = vbcast.lane.b32.xlu0 %v1009_v42, 256  ;;  %v1950_v42 = vmov 0.0  }
  0x44   : > { %1761 = vmatprep.subr.bf16.mxu0 %v1950_v42  ;;  %1777 = vmatprep.mubr.msk.bf16.mxu0 %vm1951_vm3, %v1950_v42 }
  0x45   : > { %1762 = vmatpush3.bf16.msra.mxu0 %v1846_v41 }
  0x46   : > { %962 = vbcast.lane.b32.xlu1 %v960_v43, 256  ;;  %1763 = vmatprep.subr.bf16.mxu0 %v1950_v42  ;;  %v1847_v43 = vld [vmem:[%s2356_s9 + $0x30] sm:$0xff]  }
  0x47   : > { %1018 = vbcast.lane.b32.xlu0 %v1016_v45, 256  ;;  %v1849_v45 = vld [vmem:[%s2356_s9 + $0x20] sm:$0xff]  }
  0x49   : > { %1764 = vmatpush3.bf16.msra.mxu0 %v1847_v43 }
  0x4a   : > { %969 = vbcast.lane.b32.xlu1 %v967_v46, 256  ;;  %1765 = vmatprep.subr.bf16.mxu0 %v1950_v42  ;;  %v1850_v46 = vld [vmem:[%s2356_s9 + $0x18] sm:$0xff]  }
  0x4b   : > { %1025 = vbcast.lane.b32.xlu0 %v1023_v47, 256  ;;  %v1851_v47 = vld [vmem:[%s2356_s9 + $0x10] sm:$0xff]  }
  0x4d   : > { %1766 = vmatpush3.bf16.msra.mxu0 %v1848_v44 }
  0x4e   : > { %1767 = vmatprep.subr.bf16.mxu0 %v1950_v42 }
  0x51   : > { %1768 = vmatpush3.bf16.msra.mxu0 %v1849_v45 }
  0x52   : > { %1769 = vmatprep.subr.bf16.mxu0 %v1950_v42 }
  0x55   : > { %1770 = vmatpush3.bf16.msra.mxu0 %v1850_v46 }
  0x56   : > { %1771 = vmatprep.subr.bf16.mxu0 %v1950_v42 }
  0x59   : > { %1772 = vmatpush3.bf16.msra.mxu0 %v1851_v47 }
  0x5a   : > { %1773 = vmatprep.subr.bf16.mxu0 %v1950_v42 }
  0xdf   : > { %v1715_v48 = vpop.f32.mrf.mxu0 }
  0xe0   : > { %v651_v54 = vadd.f32 %v1715_v48, %v1628_v50  ;;  %v1852_v48 = vld [vmem:[%s2356_s9 + $0x8] sm:$0xff]  }
  0xe1   : > { %v642_v49 = vpop.f32.mrf.mxu0  ;;  %1774 = vmatpush3.bf16.msra.mxu0 %v1852_v48 }
  0xe2   : > { %v643_v52 = vadd.f32 %v1628_v50, %v642_v49  ;;  %v707_v61 = vmax.f32 %v651_v54, 0.0  ;;  %1775 = vmatprep.subr.bf16.mxu0 %v1950_v42  ;;  %v1853_v49 = vld [vmem:[%s2356_s9] sm:$0xff]  }
  0xe3   : > { %v1716_v51 = vpop.f32.mrf.mxu0 }
  0xe4   : > { %v654_v53 = vadd.f32 %v1716_v51, %v1628_v50  ;;  %v705_v59 = vmax.f32 %v643_v52, 0.0 }
  0xe5   : > { %v645_v55 = vpop.f32.mrf.mxu0  ;;  %1776 = vmatpush3.bf16.msra.mxu0 %v1853_v49 }
  0xe6   : > { %v646_v56 = vadd.f32 %v1628_v50, %v645_v55  ;;  %v708_v57 = vmax.f32 %v654_v53, 0.0 }
  0xe7   : > { %v1719_v58 = vpop.f32.mrf.mxu0 }
  0xe8   : > { %v706_v60 = vmax.f32 %v646_v56, 0.0  ;;  %v722_v0 = vpack.c.bf16 %v708_v57, %v707_v61  ;;  %v667_v4 = vadd.f32 %v1719_v58, %v1628_v50  ;;  %v1142_v56 = vpop.xlane.xlu0 %1141  ;;  %v2153_v61 = vld [vmem:[%s2355_s8] ss:$0 sm:$0xff] }
  0xe9   : > { %v658_v62 = vpop.f32.mrf.mxu0  ;;  %v1146_v58 = vmax.f32 %v1142_v56, 1.0 }
  0xea   : > { %v721_v63 = vpack.c.bf16 %v706_v60, %v705_v59  ;;  %v659_v2 = vadd.f32 %v1628_v50, %v658_v62  ;;  %v711_v11 = vmax.f32 %v667_v4, 0.0 }
  0xeb   : > { %v1720_v1 = vpop.f32.mrf.mxu0  ;;  %1854 = vrcp.f32 %v1146_v58 }
  0xec   : > { %v670_v3 = vadd.f32 %v1720_v1, %v1628_v50  ;;  %1745 = vmatprep.mubr.bf16.mxu1 %v721_v63  ;;  %v709_v9 = vmax.f32 %v659_v2, 0.0  ;;  %v1145_v59 = vpop.xlane.xlu0 %1144 }
  0xed   : > { %v661_v5 = vpop.f32.mrf.mxu0  ;;  %1746 = vmatmul.mubr.bf16.vlgmr.msra.gmra.mxu1 %v722_v0 }
  0xee   : > { %v662_v6 = vadd.f32 %v1628_v50, %v661_v5  ;;  %v712_v7 = vmax.f32 %v670_v3, 0.0 }
  0xef   : > { %v1723_v8 = vpop.f32.mrf.mxu0 }
  0xf0   : > { %v710_v10 = vmax.f32 %v662_v6, 0.0  ;;  %v724_v14 = vpack.c.bf16 %v712_v7, %v711_v11  ;;  %v683_v18 = vadd.f32 %v1723_v8, %v1628_v50  ;;  %v935_v1 = vpop.permute.xlu0 %934 }
  0xf1   : > { %v674_v12 = vpop.f32.mrf.mxu0 }
  0xf2   : > { %v723_v13 = vpack.c.bf16 %v710_v10, %v709_v9  ;;  %v675_v16 = vadd.f32 %v1628_v50, %v674_v12  ;;  %v715_v25 = vmax.f32 %v683_v18, 0.0  ;;  %v1147_v9 = vmax.f32 %v1145_v59, 1.0 }
  0xf3   : > { %v1724_v15 = vpop.f32.mrf.mxu0 }
  0xf4   : > { %v686_v17 = vadd.f32 %v1724_v15, %v1628_v50  ;;  %1749 = vmatprep.mubr.bf16.mxu1 %v723_v13  ;;  %v713_v23 = vmax.f32 %v675_v16, 0.0  ;;  %1856 = vrcp.f32 %v1147_v9 }
  0xf5   : > { %v677_v19 = vpop.f32.mrf.mxu0  ;;  %1750 = vmatmul.mubr.bf16.gmra.mxu1 %v724_v14 }
  0xf6   : > { %v678_v20 = vadd.f32 %v1628_v50, %v677_v19  ;;  %v716_v21 = vmax.f32 %v686_v17, 0.0 }
  0xf7   : > { %v1727_v22 = vpop.f32.mrf.mxu0 }
  0xf8   : > { %v714_v24 = vmax.f32 %v678_v20, 0.0  ;;  %v726_v28 = vpack.c.bf16 %v716_v21, %v715_v25  ;;  %v699_v32 = vadd.f32 %v1727_v22, %v1628_v50 }
  0xf9   : > { %v690_v26 = vpop.f32.mrf.mxu0 }
  0xfa   : > { %v725_v27 = vpack.c.bf16 %v714_v24, %v713_v23  ;;  %v691_v30 = vadd.f32 %v1628_v50, %v690_v26  ;;  %v719_v38 = vmax.f32 %v699_v32, 0.0  ;;  %v2160_v23 = vpop.eup %1854 }
  0xfb   : > { %v1728_v29 = vpop.f32.mrf.mxu0 }
  0xfc   : > { %v702_v31 = vadd.f32 %v1728_v29, %v1628_v50  ;;  %1753 = vmatprep.mubr.bf16.mxu1 %v725_v27  ;;  %v717_v36 = vmax.f32 %v691_v30, 0.0 }
  0xfd   : > { %v693_v33 = vpop.f32.mrf.mxu0  ;;  %1754 = vmatmul.mubr.bf16.gmra.mxu1 %v726_v28 }
  0xfe   : > { %v694_v34 = vadd.f32 %v1628_v50, %v693_v33  ;;  %v720_v35 = vmax.f32 %v702_v31, 0.0  ;;  %v928_v50 = vpop.permute.xlu1 %927 }
 0x100   : > { %v718_v37 = vmax.f32 %v694_v34, 0.0  ;;  %v728_v40 = vpack.c.bf16 %v720_v35, %v719_v38  ;;  %v1153_v35 = vrot.slane %v2160_v23, 2 }
 0x102   : > { %v727_v39 = vpack.c.bf16 %v718_v37, %v717_v36  ;;  %v2142_v51 = vpop.permute.xlu1 %983 }
 0x104   : > { %1757 = vmatprep.mubr.bf16.mxu1 %v727_v39 }
 0x105   : > { %1758 = vmatmul.mubr.bf16.gmra.mxu1 %v728_v40 }
 0x106   : > { %v2144_v52 = vpop.permute.xlu1 %990 }
 0x10a   : > { %v921_v53 = vpop.permute.xlu1 %920 }
 0x10e   : > { %v942_v54 = vpop.permute.xlu1 %941 }
 0x112   : > { %v2146_v55 = vpop.permute.xlu1 %976 }
 0x116   : > { %v2148_v57 = vpop.permute.xlu1 %997 }
 0x11a   : > { %v949_v60 = vpop.permute.xlu1 %948 }
 0x11e   : > { %v956_v4 = vpop.permute.xlu1 %955 }
 0x122   : > { %v963_v20 = vpop.permute.xlu1 %962 }
 0x126   : > { %v970_v44 = vpop.permute.xlu1 %969 }
 0x1ad   : > { %v1747_v62 = vpop.f32.mrf.mxu1 }
 0x1ae   : > { %v843_v63 = vadd.f32 %v1747_v62, %v2153_v61 }
 0x1af   : > { %v834_v0 = vpop.f32.mrf.mxu1 }
 0x1b0   : > { %v899_v2 = vmax.f32 %v843_v63, 0.0  ;;  %v835_v3 = vadd.f32 %v2153_v61, %v834_v0 }
 0x1b1   : > { %v1748_v5 = vpop.f32.mrf.mxu1 }
 0x1b2   : > { %v897_v6 = vmax.f32 %v835_v3, 0.0  ;;  %v1029_v7 = vmul.f32 %v935_v1, %v899_v2  ;;  %v846_v8 = vadd.f32 %v1748_v5, %v2153_v61 }
 0x1b3   : > { %v837_v10 = vpop.f32.mrf.mxu1 }
 0x1b4   : > { %v1027_v11 = vmul.f32 %v921_v53, %v897_v6  ;;  %v1055_v12 = vrot.slane %v1029_v7, 4  ;;  %v900_v13 = vmax.f32 %v846_v8, 0.0  ;;  %v838_v14 = vadd.f32 %v2153_v61, %v837_v10  ;;  %v2166_v10 = vpop.eup %1856 }
 0x1b5   : > { %v1751_v15 = vpop.f32.mrf.mxu1 }
 0x1b6   : > { %v1043_v16 = vrot.slane %v1027_v11, 4  ;;  %v1056_v17 = vadd.f32 %v1055_v12, %v1029_v7  ;;  %v1030_v18 = vmul.f32 %v942_v54, %v900_v13  ;;  %v898_v19 = vmax.f32 %v838_v14, 0.0 }
 0x1b7   : > { %v859_v21 = vadd.f32 %v1751_v15, %v2153_v61  ;;  %v850_v22 = vpop.f32.mrf.mxu1  ;;  %v1154_v12 = vrot.slane %v2160_v23, 3  ;;  %v1152_v14 = vrot.slane %v2160_v23, 1 }
 0x1b8   : > { %v1044_v24 = vadd.f32 %v1043_v16, %v1027_v11  ;;  %v1057_v25 = vrot.slane %v1056_v17, 2  ;;  %v1061_v26 = vrot.slane %v1030_v18, 4  ;;  %v1028_v27 = vmul.f32 %v928_v50, %v898_v19 }
 0x1b9   : > { %v903_v28 = vmax.f32 %v859_v21, 0.0  ;;  %v851_v29 = vadd.f32 %v2153_v61, %v850_v22  ;;  %v1752_v30 = vpop.f32.mrf.mxu1  ;;  %v1157_v16 = vrot.slane %v2160_v23, 6  ;;  %v1156_v19 = vrot.slane %v2160_v23, 5 }
 0x1ba   : > { %v1045_v31 = vrot.slane %v1044_v24, 2  ;;  %v1058_v32 = vadd.f32 %v1057_v25, %v1056_v17  ;;  %v1062_v33 = vadd.f32 %v1061_v26, %v1030_v18  ;;  %v1049_v34 = vrot.slane %v1028_v27, 4  ;;  %v2171_v17 = vpop.permute.xlu0 %1004 }
 0x1bb   : > { %v901_v36 = vmax.f32 %v851_v29, 0.0  ;;  %v1033_v37 = vmul.f32 %v963_v20, %v903_v28  ;;  %v862_v38 = vadd.f32 %v1752_v30, %v2153_v61  ;;  %v853_v39 = vpop.f32.mrf.mxu1  ;;  %v1158_v20 = vrot.slane %v2160_v23, 7 }
 0x1bc   : > { %v1046_v40 = vadd.f32 %v1045_v31, %v1044_v24  ;;  %v1059_v41 = vrot.slane %v1058_v32, 1  ;;  %v1063_v42 = vrot.slane %v1062_v33, 2  ;;  %v1050_v43 = vadd.f32 %v1049_v34, %v1028_v27 }
 0x1bd   : > { %v1031_v45 = vmul.f32 %v949_v60, %v901_v36  ;;  %v1079_v46 = vrot.slane %v1033_v37, 4  ;;  %v904_v47 = vmax.f32 %v862_v38, 0.0  ;;  %v854_v48 = vadd.f32 %v2153_v61, %v853_v39  ;;  %v1755_v49 = vpop.f32.mrf.mxu1 }
 0x1be   : > { %v1047_v50 = vrot.slane %v1046_v40, 1  ;;  %v1060_v53 = vadd.f32 %v1059_v41, %v1058_v32  ;;  %v1064_v54 = vadd.f32 %v1063_v42, %v1062_v33  ;;  %v1051_v56 = vrot.slane %v1050_v43, 2 }
 0x1bf   : > { %v1067_v58 = vrot.slane %v1031_v45, 4  ;;  %v1080_v59 = vadd.f32 %v1079_v46, %v1033_v37  ;;  %v902_v62 = vmax.f32 %v854_v48, 0.0  ;;  %v1034_v63 = vmul.f32 %v970_v44, %v904_v47  ;;  %v866_v0 = vpop.f32.mrf.mxu1  ;;  %v2185_v44 = vpop.permute.xlu0 %1011 }
 0x1c0   : > { %v1065_v1 = vrot.slane %v1064_v54, 1  ;;  %v1052_v2 = vadd.f32 %v1051_v56, %v1050_v43  ;;  %v1048_v60 = vadd.f32 %v1047_v50, %v1046_v40  ;;  %v1184_v7 = vmul.f32 %v1153_v35, %v1060_v53 }
 0x1c1   : > { %v1068_v3 = vadd.f32 %v1067_v58, %v1031_v45  ;;  %v1032_v5 = vmul.f32 %v956_v4, %v902_v62  ;;  %v1756_v6 = vpop.f32.mrf.mxu1  ;;  %v1081_v8 = vrot.slane %v1080_v59, 2  ;;  %v1085_v9 = vrot.slane %v1034_v63, 4 }
 0x1c2   : > { %v1066_v11 = vadd.f32 %v1065_v1, %v1064_v54  ;;  %v1053_v13 = vrot.slane %v1052_v2, 1  ;;  %v1155_v4 = vrot.slane %v2160_v23, 4  ;;  %v1182_v22 = vmul.f32 %v2160_v23, %v1048_v60 }
 0x1c3   : > { %v1069_v15 = vrot.slane %v1068_v3, 2  ;;  %v1073_v18 = vrot.slane %v1032_v5, 4  ;;  %v869_v21 = vpop.f32.mrf.mxu1  ;;  %v1200_v24 = vpack.c.bf16 %v1184_v7, %v1184_v7  ;;  %v1082_v25 = vadd.f32 %v1081_v8, %v1080_v59 }
 0x1c4   : > { %v1086_v26 = vadd.f32 %v1085_v9, %v1034_v63  ;;  %v1185_v27 = vmul.f32 %v1154_v12, %v1066_v11  ;;  %v875_v28 = vadd.f32 %v1755_v49, %v2153_v61  ;;  %v1160_v29 = vrot.slane %v2166_v10, 2  ;;  %v1019_v11 = vpop.permute.xlu0 %1018 }
 0x1c5   : > { %v867_v30 = vadd.f32 %v2153_v61, %v866_v0  ;;  %v1054_v31 = vadd.f32 %v1053_v13, %v1052_v2  ;;  %v1070_v32 = vadd.f32 %v1069_v15, %v1068_v3  ;;  %v1161_v33 = vrot.slane %v2166_v10, 3  ;;  %v1759_v38 = vpop.f32.mrf.mxu1 }
 0x1c6   : > { %v1159_v34 = vrot.slane %v2166_v10, 1  ;;  %v1074_v35 = vadd.f32 %v1073_v18, %v1032_v5  ;;  %v907_v36 = vmax.f32 %v875_v28, 0.0  ;;  %v1162_v39 = vrot.slane %v2166_v10, 4 }
 0x1c7   : > { %v905_v37 = vmax.f32 %v867_v30, 0.0  ;;  %v1198_v40 = vpack.c.bf16 %v1182_v22, %v1182_v22  ;;  %v2183_v41 = vunpack.c.l.b16 %v1200_v24  ;;  %v1083_v42 = vrot.slane %v1082_v25, 1  ;;  %v882_v63 = vpop.f32.mrf.mxu1 }
 0x1c8   : > { %v1087_v43 = vrot.slane %v1086_v26, 2  ;;  %v1201_v45 = vpack.c.bf16 %v1185_v27, %v1185_v27  ;;  %v1037_v46 = vmul.f32 %v2144_v52, %v907_v36  ;;  %v878_v48 = vadd.f32 %v1756_v6, %v2153_v61 }
 0x1c9   : > { %v1035_v47 = vmul.f32 %v2146_v55, %v905_v37  ;;  %v1183_v49 = vmul.f32 %v1152_v14, %v1054_v31  ;;  %v1071_v50 = vrot.slane %v1070_v32, 1  ;;  %v1164_v53 = vrot.slane %v2166_v10, 6  ;;  %v1760_v18 = vpop.f32.mrf.mxu1 }
 0x1ca   : > { %v1163_v54 = vrot.slane %v2166_v10, 5  ;;  %v1075_v56 = vrot.slane %v1074_v35, 2  ;;  %v1103_v58 = vrot.slane %v1037_v46, 4  ;;  %v908_v62 = vmax.f32 %v878_v48, 0.0 }
 0x1cb   : > { %v1091_v59 = vrot.slane %v1035_v47, 4  ;;  %v2192_v0 = vunpack.c.l.b16 %v1198_v40  ;;  %v1084_v1 = vadd.f32 %v1083_v42, %v1082_v25  ;;  %v1088_v2 = vadd.f32 %v1087_v43, %v1086_v26  ;;  %v885_v40 = vpop.f32.mrf.mxu1 }
 0x1cc   : > { %v1165_v52 = vrot.slane %v2166_v10, 7  ;;  %v1272_v55 = vrot.slane %v2183_v41, 6  ;;  %v2196_v3 = vunpack.c.l.b16 %v1201_v45  ;;  %v1104_v5 = vadd.f32 %v1103_v58, %v1037_v46 }
 0x1cd   : > { %v1092_v6 = vadd.f32 %v1091_v59, %v1035_v47  ;;  %v1199_v60 = vpack.c.bf16 %v1183_v49, %v1183_v49  ;;  %v1072_v7 = vadd.f32 %v1071_v50, %v1070_v32  ;;  %v1038_v8 = vmul.f32 %v2148_v57, %v908_v62  ;;  %v1026_v47 = vpop.permute.xlu0 %1025 }
 0x1ce   : > { %v870_v9 = vadd.f32 %v2153_v61, %v869_v21  ;;  %v1076_v12 = vadd.f32 %v1075_v56, %v1074_v35  ;;  %v1105_v13 = vrot.slane %v1104_v5, 2  ;;  %v891_v15 = vadd.f32 %v1759_v38, %v2153_v61 }
 0x1cf   : > { %v1093_v14 = vrot.slane %v1092_v6, 2  ;;  %v2201_v22 = vmul.f32 %v1157_v16, %v1084_v1  ;;  %v1089_v24 = vrot.slane %v1088_v2, 1  ;;  %v1109_v25 = vrot.slane %v1038_v8, 4 }
 0x1d0   : > { %v906_v26 = vmax.f32 %v870_v9, 0.0  ;;  %v1275_v27 = vrot.slane %v2196_v3, 5  ;;  %v1106_v28 = vadd.f32 %v1105_v13, %v1104_v5  ;;  %v911_v31 = vmax.f32 %v891_v15, 0.0 }
 0x1d1   : > { %v1094_v30 = vadd.f32 %v1093_v14, %v1092_v6  ;;  %v1254_v57 = vunpack.c.l.b16 %v1199_v60  ;;  %v1110_v21 = vadd.f32 %v1109_v25, %v1038_v8  ;;  %v883_v35 = vadd.f32 %v2153_v61, %v882_v63 }
 0x1d2   : > { %v1036_v32 = vmul.f32 %v2142_v51, %v906_v26  ;;  %v1077_v36 = vrot.slane %v1076_v12, 1  ;;  %v1107_v37 = vrot.slane %v1106_v28, 1  ;;  %v1041_v38 = vmul.f32 %v1019_v11, %v911_v31 }
 0x1d3   : > { %v894_v16 = vadd.f32 %v1760_v18, %v2153_v61  ;;  %v1186_v42 = vmul.f32 %v1155_v4, %v1072_v7  ;;  %v1111_v43 = vrot.slane %v1110_v21, 2  ;;  %v909_v46 = vmax.f32 %v883_v35, 0.0 }
 0x1d4   : > { %v1097_v45 = vrot.slane %v1036_v32, 4  ;;  %v1090_v48 = vadd.f32 %v1089_v24, %v1088_v2  ;;  %v1095_v49 = vrot.slane %v1094_v30, 1  ;;  %v1127_v50 = vrot.slane %v1041_v38, 4 }
 0x1d5   : > { %v912_v56 = vmax.f32 %v894_v16, 0.0  ;;  %v1112_v51 = vadd.f32 %v1111_v43, %v1110_v21  ;;  %v1039_v59 = vmul.f32 %v2171_v17, %v909_v46  ;;  %v886_v62 = vadd.f32 %v2153_v61, %v885_v40 }
 0x1d6   : > { %v1098_v58 = vadd.f32 %v1097_v45, %v1036_v32  ;;  %v1078_v63 = vadd.f32 %v1077_v36, %v1076_v12  ;;  %v1108_v1 = vadd.f32 %v1107_v37, %v1106_v28  ;;  %v1128_v5 = vadd.f32 %v1127_v50, %v1041_v38 }
 0x1d7   : > { %v1042_v6 = vmul.f32 %v1026_v47, %v912_v56  ;;  %v1113_v4 = vrot.slane %v1112_v51, 1  ;;  %v1115_v7 = vrot.slane %v1039_v59, 4  ;;  %v910_v8 = vmax.f32 %v886_v62, 0.0 }
 0x1d8   : > { %v1099_v60 = vrot.slane %v1098_v58, 2  ;;  %v1269_v9 = vrot.slane %v1254_v57, 7  ;;  %v1096_v2 = vadd.f32 %v1095_v49, %v1094_v30  ;;  %v1129_v11 = vrot.slane %v1128_v5, 2 }
 0x1d9   : > { %v1133_v13 = vrot.slane %v1042_v6, 4  ;;  %v1114_v14 = vadd.f32 %v1113_v4, %v1112_v51  ;;  %v1116_v18 = vadd.f32 %v1115_v7, %v1039_v59  ;;  %v1040_v17 = vmul.f32 %v2185_v44, %v910_v8 }
 0x1da   : > { %v1100_v15 = vadd.f32 %v1099_v60, %v1098_v58  ;;  %v1187_v61 = vmul.f32 %v1156_v19, %v1078_v63  ;;  %v1192_v12 = vmul.f32 %v1160_v29, %v1108_v1  ;;  %v1130_v24 = vadd.f32 %v1129_v11, %v1128_v5 }
 0x1db   : > { %v1134_v25 = vadd.f32 %v1133_v13, %v1042_v6  ;;  %v1202_v26 = vpack.c.bf16 %v1186_v42, %v1186_v42  ;;  %v1117_v31 = vrot.slane %v1116_v18, 2  ;;  %v1121_v30 = vrot.slane %v1040_v17, 4 }
 0x1dc   : > { %v1101_v28 = vrot.slane %v1100_v15, 1  ;;  %v1271_v57 = vsel %vm1270_vm4, %v1269_v9, %v2192_v0  ;;  %v1190_v21 = vmul.f32 %v2166_v10, %v1096_v2  ;;  %v1131_v32 = vrot.slane %v1130_v24, 1 }
 0x1dd   : > { %v1135_v35 = vrot.slane %v1134_v25, 2  ;;  %v1193_v44 = vmul.f32 %v1161_v33, %v1114_v14  ;;  %v1118_v36 = vadd.f32 %v1117_v31, %v1116_v18  ;;  %v1122_v37 = vadd.f32 %v1121_v30, %v1040_v17 }
 0x1de   : > { %v1102_v19 = vadd.f32 %v1101_v28, %v1100_v15  ;;  %v1203_v29 = vpack.c.bf16 %v1187_v61, %v1187_v61  ;;  %v1208_v38 = vpack.c.bf16 %v1192_v12, %v1192_v12  ;;  %v1132_v16 = vadd.f32 %v1131_v32, %v1130_v24 }
 0x1df   : > { %v1136_v40 = vadd.f32 %v1135_v35, %v1134_v25  ;;  %v1189_v42 = vmul.f32 %v1158_v20, %v1090_v48  ;;  %v1119_v43 = vrot.slane %v1118_v36, 1  ;;  %v1123_v45 = vrot.slane %v1122_v37, 2 }
 0x1e0   : > { %v1191_v0 = vmul.f32 %v1159_v34, %v1102_v19  ;;  %v1274_v33 = vsel %vm1273_vm5, %v1272_v55, %v1271_v57  ;;  %v1257_v46 = vunpack.c.l.b16 %v1202_v26  ;;  %v1206_v47 = vpack.c.bf16 %v1190_v21, %v1190_v21 }
 0x1e1   : > { %v1137_v49 = vrot.slane %v1136_v40, 1  ;;  %v1209_v50 = vpack.c.bf16 %v1193_v44, %v1193_v44  ;;  %v1120_v51 = vadd.f32 %v1119_v43, %v1118_v36  ;;  %v1124_v58 = vadd.f32 %v1123_v45, %v1122_v37 }
 0x1e2   : > { %v1207_v56 = vpack.c.bf16 %v1191_v0, %v1191_v0  ;;  %v1258_v59 = vunpack.c.l.b16 %v1203_v29  ;;  %v1263_v62 = vunpack.c.l.b16 %v1208_v38  ;;  %v1196_v23 = vmul.f32 %v1164_v53, %v1132_v16  ;;  %v1654_v29 = vld [vmem:[%s2357_s10] ss:$0 sm:$0xff] }
 0x1e3   : > { %v1138_v20 = vadd.f32 %v1137_v49, %v1136_v40  ;;  %v1204_v34 = vpack.c.bf16 %v2201_v22, %v2201_v22  ;;  %v1194_v41 = vmul.f32 %v1162_v39, %v1120_v51  ;;  %v1125_v55 = vrot.slane %v1124_v58, 1  ;;  %v1406_v16 = vld [vmem:[%s505_s28] sm:$0xff] }
 0x1e4   : > { %v1262_v48 = vunpack.c.l.b16 %v1207_v56  ;;  %v1277_v63 = vsel %vm1276_vm6, %v1275_v27, %v1274_v33  ;;  %v1205_v1 = vpack.c.bf16 %v1189_v42, %v1189_v42  ;;  %v1261_v5 = vunpack.c.l.b16 %v1206_v47  ;;  %v1410_v42 = vld [vmem:[%s499_s20] sm:$0xff] }
 0x1e5   : > { %v1197_v6 = vmul.f32 %v1165_v52, %v1138_v20  ;;  %v1264_v4 = vunpack.c.l.b16 %v1209_v50  ;;  %v1210_v60 = vpack.c.bf16 %v1194_v41, %v1194_v41  ;;  %v1126_v7 = vadd.f32 %v1125_v55, %v1124_v58  ;;  %v1411_v50 = vld [vmem:[%s499_s20 + $0x8] sm:$0xff]  ;;  %s2283_s20 = scalar_lea.vmem %s2351_s4, %s2109_s18 }
 0x1e6   : > { %v1290_v53 = vrot.slane %v1262_v48, 7  ;;  %v1278_v8 = vrot.slane %v1257_v46, 4  ;;  %v1281_v22 = vrot.slane %v1258_v59, 3  ;;  %v1292_v9 = vrot.slane %v1263_v62, 6  ;;  %v1407_v46 = vld [vmem:[%s505_s28 + $0x8] sm:$0xff] }
 0x1e7   : > { %v1212_v2 = vpack.c.bf16 %v1196_v23, %v1196_v23  ;;  %v1265_v11 = vunpack.c.l.b16 %v1210_v60  ;;  %v1195_v3 = vmul.f32 %v1163_v54, %v1126_v7  ;;  %v1213_v27 = vpack.c.bf16 %v1197_v6, %v1197_v6 }
 0x1e8   : > { %v1291_v39 = vsel %vm1270_vm4, %v1290_v53, %v1261_v5  ;;  %v1259_v13 = vunpack.c.l.b16 %v1204_v34  ;;  %v1294_v52 = vrot.slane %v1264_v4, 5  ;;  %v1280_v18 = vsel %vm1279_vm7, %v1278_v8, %v1277_v63 }
 0x1e9   : > { %v1293_v14 = vsel %vm1273_vm5, %v1292_v9, %v1291_v39  ;;  %v1211_v15 = vpack.c.bf16 %v1195_v3, %v1195_v3  ;;  %v1260_v17 = vunpack.c.l.b16 %v1205_v1  ;;  %v1296_v61 = vrot.slane %v1265_v11, 4 }
 0x1ea   : > { %v1267_v12 = vunpack.c.l.b16 %v1212_v2  ;;  %v1283_v24 = vsel %vm1282_vm8, %v1281_v22, %v1280_v18  ;;  %v1295_v25 = vsel %vm1276_vm6, %v1294_v52, %v1293_v14  ;;  %v1268_v10 = vunpack.c.l.b16 %v1213_v27 }
 0x1eb   : > { %v1266_v26 = vunpack.c.l.b16 %v1211_v15  ;;  %v1284_v54 = vrot.slane %v1259_v13, 2  ;;  %v1297_v31 = vsel %vm1279_vm7, %v1296_v61, %v1295_v25  ;;  %v1287_v21 = vrot.slane %v1260_v17, 1 }
 0x1ec   : > { %v1300_v30 = vrot.slane %v1267_v12, 2  ;;  %v1302_v35 = vrot.slane %v1268_v10, 1 }
 0x1ed   : > { %v1298_v28 = vrot.slane %v1266_v26, 3  ;;  %v1286_v57 = vsel %vm1285_vm9, %v1284_v54, %v1283_v24 }
 0x1ee   : > { %v1289_v19 = vsel %vm1288_vm10, %v1287_v21, %v1286_v57 }
 0x1ef   : > { %v1299_v32 = vsel %vm1282_vm8, %v1298_v28, %v1297_v31 }
 0x1f0   : > { %v1301_v44 = vsel %vm1285_vm9, %v1300_v30, %v1299_v32 }
 0x1f1   : > { %v1303_v36 = vsel %vm1288_vm10, %v1302_v35, %v1301_v44 }
 0x1f2   : > { %v1304_v37 = vpack.c.b16 %v1303_v36, %v1289_v19 }
 0x1f4   : > { %1778 = vmatmul.mubr.bf16.vlgmr.msra.gmra.mxu0 %v1304_v37 }
 0x2b4   : > { %v1388_v38 = vpop.f32.mrf.mxu0 }
 0x2b5   : > { %v1389_v40 = vadd.f32 %v1654_v29, %v1388_v38 }
 0x2b6   : > { %v1779_v0 = vpop.f32.mrf.mxu0 }
 0x2b7   : > { %v1674_v43 = vpack.c.bf16 %v1389_v40, %v1389_v40  ;;  %v1408_v45 = vadd.f32 %v1406_v16, %v1389_v40 }
 0x2b8   : > { %v1391_v33 = vpop.f32.mrf.mxu0 }
 0x2b9   : > { %1404 = vst.msk [vmem:[%s475_s30] sm:$0xf] %vm1403_vm11, %v1674_v43  ;;  %v1412_v47 = vsub.f32 %v1408_v45, %v1410_v42  ;;  %v1392_v49 = vadd.f32 %v1654_v29, %v1391_v33 }
 0x2ba   : > { %v1780_v56 = vpop.f32.mrf.mxu0 }
 0x2bb   : > { %v1414_v51 = vand.u32 2147483647, %v1412_v47  ;;  %v1418_v58 = vmul.f32 0.5, %v1412_v47  ;;  %v1675_v59 = vpack.c.bf16 %v1392_v49, %v1392_v49  ;;  %v1409_v62 = vadd.f32 %v1407_v46, %v1392_v49 }
 0x2bd   : > { %v1420_v23 = vmul.f32 %v1418_v58, %v1412_v47  ;;  %1405 = vst.msk [vmem:[%s475_s30 + $0x4] sm:$0xf] %vm1403_vm11, %v1675_v59  ;;  %v1413_v20 = vsub.f32 %v1409_v62, %v1411_v50 }
 0x2be   : > { %1871 = shalt.err (!%p1868_p4)
}
 0x2bf   : > { %s1872_s18 = scalar_lea.hbm %s2274_s19, 128  ;;  %s1876_s0 = scalar_lea.hbm %s2358_s11, 256 }
 0x2c0   : > { %p1873_p7 = scmp.ne.s32.totalorder %s2274_s19, %s1872_s18  ;;  %p1877_p10 = scmp.lt.s32.totalorder %s2274_s19, %s2358_s11 }
 0x2c1   : > { %p1878_p11 = scmp.lt.s32.totalorder %s1876_s0, %s1872_s18 }
 0x2c2   : > { %p1874_p8 = pnand %p1873_p7, %p2059_p5 }
 0x2c3   : > { %p1879_p12 = por %p1878_p11, %p1877_p10 }
 0x2c4   : > { %p1875_p9 = pneg %p1874_p8 }
 0x2c6   : > { %p1880_p13 = pnand %p1879_p12, %p1875_p9 }
 0x2c8   : > { %1883 = shalt.err (!%p1880_p13)
}
 0x2c9   : > { %s1953_s1 = smov 64   ;;  %s1954_s16 = smov 4   ;;  %v1423_v34 = vmul.f32 9.0, %v1420_v23  ;;  %v1665_v48 = vadd.f32 -0.055555556, %v1414_v51  ;;  %v1419_v55 = vmul.f32 0.5, %v1413_v20 }
 0x2ca   : > { %s2371_s15 = scalar_lea.sflag [#allocation3], %s2251_s5  ;;  %v1415_v41 = vand.u32 2147483647, %v1413_v20  ;;  %vm1416_vm12 = vcmp.lt.f32.partialorder %v1414_v51, 0.11111111  ;;  %v1429_v5 = vld [vmem:[%s2283_s20] sm:$0xff] }
 0x2cb   : > { %1782 = dma.vmem_to_hbm [thread:$0]  (%p2059_p5), %s2276_s26, 128, %s2274_s19, %s2371_s15, %s1953_s1, %s1953_s1, %s1954_s16   ;;  %v1421_v63 = vmul.f32 %v1419_v55, %v1413_v20  ;;  %v1427_v1 = vsel %vm1416_vm12, %v1423_v34, %v1665_v48  ;;  %vm1433_vm14 = vcmask 261120  }
 0x2cc   : > { %v1666_v4 = vadd.f32 -0.055555556, %v1415_v41  ;;  %v1430_v53 = vld [vmem:[%s2283_s20 + $0x8] sm:$0xff]  ;;  %vm1417_vm13 = vcmp.lt.f32.partialorder %v1415_v41, 0.11111111  ;;  %v1431_v60 = vmul.f32 %v1429_v5, %v1427_v1  ;;  %s2372_s26 = sshll.u32 %s2251_s5, 3 }
 0x2cd   : > { %v1424_v6 = vmul.f32 9.0, %v1421_v63  ;;  %s482_s19 = scalar_lea.vmem [#allocation4], %s2372_s26  ;;  %s2373_s18 = sshll.u32 %s2042_s25, 7 }
 0x2ce   : > { %s1473_s29 = sshll.u32 %s482_s19, 4  ;;  %v1434_v22 = vsel %vm1433_vm14, %v1431_v60, 0.0  ;;  %s1471_s0 = scalar_lea.hbm %s2359_s12, %s2373_s18  ;;  %s1474_s29 = int_to_ptr.vmem [resolvable:$true] %s1473_s29 }
 0x2cf   : > { %v1428_v7 = vsel %vm1417_vm13, %v1424_v6, %v1666_v4  ;;  %s1444_s20 = scalar_lea.sflag [#allocation5], %s2251_s5  ;;  %s1884_s17 = scalar_lea.vmem %s1474_s29, 128 }
 0x2d0   : > { %v1432_v8 = vmul.f32 %v1430_v53, %v1428_v7  ;;  %p1885_p0 = scmp.ne.s32.totalorder %s1474_s29, %s1884_s17  ;;  %s1955_s1 = smov [#allocation4]  }
 0x2d1   : > { %s1888_s16 = sshll.u32 %s1955_s1, 4  ;;  %s1889_s16 = int_to_ptr.vmem [resolvable:$false] %s1888_s16 }
 0x2d2   : > { %v1435_v9 = vsel %vm1433_vm14, %v1432_v8, 0.0  ;;  %p1886_p1 = pnand %p1885_p0, %p2059_p5  ;;  %s1890_s15 = scalar_lea.vmem %s1889_s16, 256 }
 0x2d3   : > { %v1436_v2 = vadd.f32 %v1435_v9, %v1434_v22  ;;  %p1891_p3 = scmp.lt.s32.totalorder %s1474_s29, %s1889_s16  ;;  %p1892_p4 = scmp.lt.s32.totalorder %s1890_s15, %s1884_s17 }
 0x2d4   : > { %p1887_p2 = pneg %p1886_p1 }
 0x2d5   : > { %1437 = vst.msk [vmem:[%s482_s19] sm:$0xff] %vm1433_vm14, %v1436_v2  ;;  %p1893_p7 = por %p1892_p4, %p1891_p3 }
 0x2d7   : > { %p1894_p8 = pnand %p1893_p7, %p1887_p2 }
 0x2d9   : > { %1897 = shalt.err (!%p1894_p8)
}
 0x2da   : > { %s1898_s25 = scalar_lea.hbm %s1471_s0, 128  ;;  %s1902_s19 = scalar_lea.hbm %s2359_s12, 256 }
 0x2db   : > { %p1899_p9 = scmp.ne.s32.totalorder %s1471_s0, %s1898_s25  ;;  %p1903_p12 = scmp.lt.s32.totalorder %s1471_s0, %s2359_s12 }
 0x2dc   : > { %p1904_p13 = scmp.lt.s32.totalorder %s1902_s19, %s1898_s25 }
 0x2dd   : > { %p1900_p10 = pnand %p1899_p9, %p2059_p5 }
 0x2de   : > { %p1905_p0 = por %p1904_p13, %p1903_p12 }
 0x2df   : > { %p1901_p11 = pneg %p1900_p10 }
 0x2e1   : > { %p1906_p1 = pnand %p1905_p0, %p1901_p11 }
 0x2e3   : > { %1909 = shalt.err (!%p1906_p1)
}
 0x2e4   : > { %1783 = dma.vmem_to_hbm [thread:$0]  (%p2059_p5), %s1474_s29, 128, %s1471_s0, %s1444_s20  }
 0x2e5 PF: > { %p1793_p2 = scmp.ge.s32.totalorder %s1948_s24, 2  ;;  %s1485_s28 = sand.u32 1, %s1936_s21  }
 0x2e6   : > { %s1486_s17 = scalar_lea.sflag [#allocation3], %s1485_s28 }
 0x2e7   : > { %p1787_p3 = pnand %p1793_p2, %p2063_p6 }
 0x2e9   : > { %p1788_p4 = pneg %p1787_p3 }
 0x2eb   : > { %1927 = dma.done.wait (%p1788_p4), %s1486_s17, 128  }
 0x2ec   : > { %1929 = vsyncadd (%p1788_p4), %s1486_s17, 4294967168  ;;  %s1495_s1 = scalar_lea.sflag [#allocation5], %s1485_s28 }
 0x2ed   : > { %1931 = dma.done.wait (%p1788_p4), %s1495_s1, 128  }
 0x2ee   : > { %1933 = vsyncadd (%p1788_p4), %s1495_s1, 4294967168  ;;  %s2374_s13 = sld [smem:[#allocation8_spill]]  ;;  %p26_p5 = scmp.ge.s32.totalorder %s2046_s27, 4  }
 0x2ef   : > { %s2375_s21 = smov %s1940_s22  ;;  %s2376_s22 = smov %s1944_s23 }
 0x2f0   : > { %s2378_s24 = smov %s2046_s27  ;;  %28 = sbr.rel (!%p26_p5) target bundleno = 9 (0x9), region = 128 }
 0x2f4   : > { %s2377_s23 = smov %s2374_s13 }
 0x2f5   :  { %1500 = vsyncpa [#allocation3], 1 }
 0x2f6   :  { %1502 = vsyncpa [#allocation3 + $0x1], 1 }
 0x2f7   :  { %1503 = vsyncpa [#allocation5], 1 }
 0x2f8   :  { %1505 = vsyncpa [#allocation5 + $0x1], 1 }

</bundles_post_ra>
